<compile_context>
chip_gen: v5e
topology: v5e:2x2
jax: 0.10.0
libtpu: 0.0.40
codegen_flags: <defaults>
</compile_context>

<pallas_src>
import functools

import jax
import jax.numpy as jnp
from jax.experimental import pallas as pl
from jax.experimental.pallas import tpu as pltpu

LANE = 128      # vreg lane width (last dim)
SUBLANE = 8     # vreg sublane width (second-to-last dim)


def _round_up(x, m):
    return (x + m - 1) // m * m


def _fused_mlp_kernel(x_ref, *args, num_layers):
    """args = (w0, b0, w1, b1, ..., w_{L-1}, b_{L-1}, out_ref).

    Layer loop is unrolled at trace time; intermediates stay in vregs /
    compiler-managed VMEM.  x/W are bf16 (MXU-native), accumulation, bias-add
    and ReLU are f32, inter-layer activations are cast back to bf16.
    """
    out_ref = args[-1]
    wb = args[:-1]
    h = x_ref[...]                                         # bf16 LHS
    for i in range(num_layers):
        w = wb[2 * i][...]                                 # bf16 RHS
        b = wb[2 * i + 1][...]                             # f32 (1, N) bias
        acc = jnp.dot(h, w, preferred_element_type=jnp.float32) + b
        if i < num_layers - 1:
            h = jnp.maximum(acc, 0.0).astype(x_ref.dtype)  # ReLU in f32 -> bf16
        else:
            h = acc                                        # last layer stays f32
    out_ref[...] = h.astype(out_ref.dtype)


def _vmem_capacity_bytes():
    try:
        return int(pltpu.get_tpu_info().vmem_capacity_bytes)
    except Exception:
        return 64 * 1024 * 1024        # conservative: v7x per-TensorCore VMEM


def mlp_forward(x, params, *, tile_m=1024, mxu_dtype=jnp.bfloat16):
    """Fused MLP forward.  x: (M, input_dim); params: list of (W (in,out), b (out,))."""
    M, K = x.shape
    num_layers = len(params)
    dims_in = [w.shape[0] for w, _ in params]
    dims_out = [w.shape[1] for w, _ in params]
    assert dims_in[0] == K
    for i in range(1, num_layers):
        assert dims_in[i] == dims_out[i - 1]
    out_dim = dims_out[-1]
    out_dtype = jnp.float32

    # --- lane-dense padding of feature dims (zeros -> math unchanged) -------
    dims_in_p = [_round_up(d, LANE) for d in dims_in]
    dims_out_p = [_round_up(d, LANE) for d in dims_out]
    k0_p, n_last_p = dims_in_p[0], dims_out_p[-1]
    max_dim_p = max(dims_in_p + dims_out_p)

    # Rows padded only to a sublane multiple; grid uses cdiv and relies on
    # Pallas ragged-edge handling (rows are independent, so OOB rows in the
    # last tile are harmless and sliced off below).
    M_pad = _round_up(max(M, 1), SUBLANE)

    # --- pad & cast operands: bf16 x/W for the MXU, f32 biases --------------
    x_p = (jnp.zeros((M_pad, k0_p), mxu_dtype)
           .at[:M, :K].set(x.astype(mxu_dtype)))
    padded_params = []
    for i, (w, b) in enumerate(params):
        w_p = (jnp.zeros((dims_in_p[i], dims_out_p[i]), mxu_dtype)
               .at[:dims_in[i], :dims_out[i]].set(w.astype(mxu_dtype)))
        b_p = (jnp.zeros((1, dims_out_p[i]), jnp.float32)
               .at[:, :dims_out[i]].set(b.astype(jnp.float32).reshape(1, -1)))
        padded_params.append((w_p, b_p))

    mxu_itemsize = x_p.dtype.itemsize
    out_itemsize = jnp.zeros((), out_dtype).dtype.itemsize

    # --- honest VMEM accounting with generation-aware cap -------------------
    budget = int(_vmem_capacity_bytes() * 0.85)   # ~54 MiB v7x, ~109 MiB v5e/v6e
    slack = 2 * 1024 * 1024                       # compiler scratch / semaphores
    # Weights counted at 2 buffers: safe upper bound (they request Buffered(1)
    # below, but the no-pipeline_mode fallback keeps default double buffering).
    w_resident = 2 * sum(w.size * w.dtype.itemsize + b.size * b.dtype.itemsize
                         for w, b in padded_params)
    # Deeper x pipeline when the features are tiny (DMA-bound regime).
    x_bufs = 3 if max_dim_p <= 256 else 2

    def _tile_bytes(tm_try):
        x_tile = x_bufs * tm_try * k0_p * mxu_itemsize
        out_tile = 2 * tm_try * n_last_p * out_itemsize
        inter = 3 * tm_try * max_dim_p * 4        # f32 acc/ReLU temps + bf16 h
        return x_tile + out_tile + inter

    tm = min(_round_up(tile_m, SUBLANE), M_pad)
    while tm > SUBLANE and w_resident + _tile_bytes(tm) + slack > budget:
        tm = max(SUBLANE, _round_up(tm // 2, SUBLANE))
    if w_resident + _tile_bytes(tm) + slack > budget:
        # TODO(synk): stream the largest layer's weights with a nested
        # pltpu.emit_pipeline instead of keeping everything resident (v7x).
        raise NotImplementedError(
            "MLP weights too large to keep resident in VMEM on this TPU.")

    grid_m = pl.cdiv(M_pad, tm)
    vmem_needed = w_resident + _tile_bytes(tm) + slack
    vmem_limit = int(max(min(vmem_needed, budget), min(16 * 1024 * 1024, budget)))

    flat_wb = [t for wp_bp in padded_params for t in wp_bp]
    out_specs = pl.BlockSpec((tm, n_last_p), lambda i: (i, 0))
    out_shape = jax.ShapeDtypeStruct((M_pad, n_last_p), out_dtype)

    flops = int(2 * grid_m * tm
                * sum(ki * no for ki, no in zip(dims_in_p, dims_out_p)))
    bytes_accessed = int(
        x_p.size * mxu_itemsize
        + sum(w.size * w.dtype.itemsize + b.size * b.dtype.itemsize
              for w, b in padded_params)
        + M_pad * n_last_p * out_itemsize)

    kernel = functools.partial(_fused_mlp_kernel, num_layers=num_layers)

    def _make_in_specs(use_pipeline_mode):
        x_kw, wb_kw = {}, {}
        if use_pipeline_mode:
            if x_bufs != 2:
                x_kw = dict(pipeline_mode=pl.Buffered(x_bufs))
            wb_kw = dict(pipeline_mode=pl.Buffered(1))   # resident: single buffer
        specs = [pl.BlockSpec((tm, k0_p), lambda i: (i, 0), **x_kw)]
        for w_p, b_p in padded_params:
            specs.append(pl.BlockSpec(w_p.shape, lambda i: (0, 0), **wb_kw))
            specs.append(pl.BlockSpec(b_p.shape, lambda i: (0, 0), **wb_kw))
        return specs

    def _call(in_specs):
        return pl.pallas_call(
            kernel,
            out_shape=out_shape,
            grid=(grid_m,),
            in_specs=in_specs,
            out_specs=out_specs,
            compiler_params=pltpu.CompilerParams(
                dimension_semantics=("parallel",),
                vmem_limit_bytes=vmem_limit,
            ),
            cost_estimate=pl.CostEstimate(
                flops=flops, transcendentals=0, bytes_accessed=bytes_accessed),
        )(x_p, *flat_wb)

    try:
        out = _call(_make_in_specs(True))
    except Exception:
        # Fallback for Pallas versions without BlockSpec.pipeline_mode support.
        out = _call(_make_in_specs(False))

    # Slice off row and lane padding outside the kernel.
    return out[:M, :out_dim]


def init_mlp_params(key, input_dim, hidden_dim, output_dim, num_layers,
                    dtype=jnp.float32):
    """Deterministic init mirroring nn.Linear shapes (W stored as (in, out))."""
    h = [hidden_dim] * (num_layers - 1)
    dims_in = [input_dim] + h
    dims_out = h + [output_dim]
    params = []
    for n_in, n_out in zip(dims_in, dims_out):
        key, kw, kb = jax.random.split(key, 3)
        bound = 1.0 / (n_in ** 0.5)   # PyTorch default uniform bound
        w = jax.random.uniform(kw, (n_in, n_out), dtype, -bound, bound)
        b = jax.random.uniform(kb, (n_out,), dtype, -bound, bound)
        params.append((w, b))
    return params


def _ref_mlp(x, params, dot_dtype=None):
    """Plain-JAX reference.  dot_dtype=None: exact PyTorch (f32) semantics;
    dot_dtype=bf16: mirrors the kernel's MXU math for a tight structural check."""
    num_layers = len(params)
    h = x
    for i, (w, b) in enumerate(params):
        hd = h if dot_dtype is None else h.astype(dot_dtype)
        wd = w if dot_dtype is None else w.astype(dot_dtype)
        h = jnp.dot(hd, wd, preferred_element_type=jnp.float32) + b[None, :]
        if i < num_layers - 1:
            h = jnp.maximum(h, 0.0)
    return h


if __name__ == "__main__":
    key = jax.random.PRNGKey(0)
    k_x, k_x2, k_p = jax.random.split(key, 3)

    # Small shapes consistent with the module: dims 32 -> 64 -> 64 -> 16.
    batch, input_dim, hidden_dim, output_dim, num_layers = 8, 32, 64, 16, 3
    params = init_mlp_params(k_p, input_dim, hidden_dim, output_dim, num_layers)

    # Test 1: tiny batch (single grid step, heavy lane padding).
    x = jax.random.normal(k_x, (batch, input_dim), jnp.float32)
    out = jax.block_until_ready(mlp_forward(x, params))
    assert out.shape == (batch, output_dim)
    # Structural check against a bf16-matched reference (tight tolerance).
    assert jnp.allclose(out, _ref_mlp(x, params, dot_dtype=jnp.bfloat16),
                        atol=2e-3, rtol=2e-3)
    # Semantic check against the f32 PyTorch-equivalent reference.
    assert jnp.allclose(out, _ref_mlp(x, params), atol=5e-2, rtol=5e-2)

    # Test 2: non-aligned batch -> 3 grid steps with a ragged last tile.
    x2 = jax.random.normal(k_x2, (300, input_dim), jnp.float32)
    out2 = jax.block_until_ready(mlp_forward(x2, params, tile_m=128))
    assert out2.shape == (300, output_dim)
    assert jnp.allclose(out2, _ref_mlp(x2, params, dot_dtype=jnp.bfloat16),
                        atol=2e-3, rtol=2e-3)
    assert jnp.allclose(out2, _ref_mlp(x2, params), atol=5e-2, rtol=5e-2)

    print("KERNEL_OK")
</pallas_src>

<mosaic_0001>
module attributes {stable_mosaic.version = 11 : i64} {
  func.func @_fused_mlp_kernel(%arg0: i32, %arg1: memref<8x128xbf16, #tpu.memory_space<vmem>>, %arg2: memref<128x128xbf16, #tpu.memory_space<vmem>>, %arg3: memref<1x128xf32, #tpu.memory_space<vmem>>, %arg4: memref<128x128xbf16, #tpu.memory_space<vmem>>, %arg5: memref<1x128xf32, #tpu.memory_space<vmem>>, %arg6: memref<128x128xbf16, #tpu.memory_space<vmem>>, %arg7: memref<1x128xf32, #tpu.memory_space<vmem>>, %arg8: memref<8x128xf32, #tpu.memory_space<vmem>>) attributes {dimension_semantics = [#tpu.dimension_semantics<parallel>], iteration_bounds = array<i64: 1>, scalar_prefetch = 0 : i64, scratch_operands = 0 : i64, tpu.core_type = #tpu.core_type<tc>, window_params = [{transform_indices = @transform_0, window_bounds = array<i64: 8, 128>}, {pipeline_mode = #tpu.pipeline_mode<synchronous>, transform_indices = @transform_1, window_bounds = array<i64: 128, 128>}, {pipeline_mode = #tpu.pipeline_mode<synchronous>, transform_indices = @transform_2, window_bounds = array<i64: 1, 128>}, {pipeline_mode = #tpu.pipeline_mode<synchronous>, transform_indices = @transform_3, window_bounds = array<i64: 128, 128>}, {pipeline_mode = #tpu.pipeline_mode<synchronous>, transform_indices = @transform_4, window_bounds = array<i64: 1, 128>}, {pipeline_mode = #tpu.pipeline_mode<synchronous>, transform_indices = @transform_5, window_bounds = array<i64: 128, 128>}, {pipeline_mode = #tpu.pipeline_mode<synchronous>, transform_indices = @transform_6, window_bounds = array<i64: 1, 128>}, {transform_indices = @transform_7, window_bounds = array<i64: 8, 128>}]} {
    %c0 = arith.constant 0 : index
    %c0_0 = arith.constant 0 : index
    %0 = vector.load %arg1[%c0, %c0_0] : memref<8x128xbf16, #tpu.memory_space<vmem>>, vector<8x128xbf16>
    %c0_1 = arith.constant 0 : index
    %c0_2 = arith.constant 0 : index
    %1 = vector.load %arg2[%c0_1, %c0_2] : memref<128x128xbf16, #tpu.memory_space<vmem>>, vector<128x128xbf16>
    %c0_3 = arith.constant 0 : index
    %c0_4 = arith.constant 0 : index
    %2 = vector.load %arg3[%c0_3, %c0_4] : memref<1x128xf32, #tpu.memory_space<vmem>>, vector<1x128xf32>
    %cst = arith.constant dense<0.000000e+00> : vector<8x128xf32>
    %3 = tpu.matmul %0, %1, %cst {dimension_numbers = #tpu.dot_dimension_numbers<[1], [0], [0], [1], [0, 0, 1, 1], [], []>} : vector<8x128xbf16>, vector<128x128xbf16>, vector<8x128xf32> -> vector<8x128xf32>
    %4 = vector.broadcast %2 : vector<1x128xf32> to vector<8x128xf32>
    %5 = arith.addf %3, %4 : vector<8x128xf32>
    %cst_5 = arith.constant 0.000000e+00 : f32
    %6 = vector.broadcast %cst_5 : f32 to vector<8x128xf32>
    %7 = arith.maximumf %5, %6 : vector<8x128xf32>
    %8 = arith.truncf %7 : vector<8x128xf32> to vector<8x128xbf16>
    %c0_6 = arith.constant 0 : index
    %c0_7 = arith.constant 0 : index
    %9 = vector.load %arg4[%c0_6, %c0_7] : memref<128x128xbf16, #tpu.memory_space<vmem>>, vector<128x128xbf16>
    %c0_8 = arith.constant 0 : index
    %c0_9 = arith.constant 0 : index
    %10 = vector.load %arg5[%c0_8, %c0_9] : memref<1x128xf32, #tpu.memory_space<vmem>>, vector<1x128xf32>
    %cst_10 = arith.constant dense<0.000000e+00> : vector<8x128xf32>
    %11 = tpu.matmul %8, %9, %cst_10 {dimension_numbers = #tpu.dot_dimension_numbers<[1], [0], [0], [1], [0, 0, 1, 1], [], []>} : vector<8x128xbf16>, vector<128x128xbf16>, vector<8x128xf32> -> vector<8x128xf32>
    %12 = vector.broadcast %10 : vector<1x128xf32> to vector<8x128xf32>
    %13 = arith.addf %11, %12 : vector<8x128xf32>
    %cst_11 = arith.constant 0.000000e+00 : f32
    %14 = vector.broadcast %cst_11 : f32 to vector<8x128xf32>
    %15 = arith.maximumf %13, %14 : vector<8x128xf32>
    %16 = arith.truncf %15 : vector<8x128xf32> to vector<8x128xbf16>
    %c0_12 = arith.constant 0 : index
    %c0_13 = arith.constant 0 : index
    %17 = vector.load %arg6[%c0_12, %c0_13] : memref<128x128xbf16, #tpu.memory_space<vmem>>, vector<128x128xbf16>
    %c0_14 = arith.constant 0 : index
    %c0_15 = arith.constant 0 : index
    %18 = vector.load %arg7[%c0_14, %c0_15] : memref<1x128xf32, #tpu.memory_space<vmem>>, vector<1x128xf32>
    %cst_16 = arith.constant dense<0.000000e+00> : vector<8x128xf32>
    %19 = tpu.matmul %16, %17, %cst_16 {dimension_numbers = #tpu.dot_dimension_numbers<[1], [0], [0], [1], [0, 0, 1, 1], [], []>} : vector<8x128xbf16>, vector<128x128xbf16>, vector<8x128xf32> -> vector<8x128xf32>
    %20 = vector.broadcast %18 : vector<1x128xf32> to vector<8x128xf32>
    %21 = arith.addf %19, %20 : vector<8x128xf32>
    %c0_17 = arith.constant 0 : index
    %c0_18 = arith.constant 0 : index
    %22 = vector.load %arg8[%c0_17, %c0_18] : memref<8x128xf32, #tpu.memory_space<vmem>>, vector<8x128xf32>
    tpu.vector_store %arg8[%c0_17, %c0_18], %21 {strides = array<i32>} : memref<8x128xf32, #tpu.memory_space<vmem>>, vector<8x128xf32>,
    return
  }
  func.func @transform_0(%arg0: i32) -> (i32, i32) {
    %c0_i32 = arith.constant 0 : i32
    %c0_i32_0 = arith.constant 0 : i32
    return %arg0, %c0_i32 : i32, i32
  }
  func.func @transform_1(%arg0: i32) -> (i32, i32) {
    %c0_i32 = arith.constant 0 : i32
    %c0_i32_0 = arith.constant 0 : i32
    %c0_i32_1 = arith.constant 0 : i32
    return %c0_i32, %c0_i32_0 : i32, i32
  }
  func.func @transform_2(%arg0: i32) -> (i32, i32) {
    %c0_i32 = arith.constant 0 : i32
    %c0_i32_0 = arith.constant 0 : i32
    %c0_i32_1 = arith.constant 0 : i32
    return %c0_i32, %c0_i32_0 : i32, i32
  }
  func.func @transform_3(%arg0: i32) -> (i32, i32) {
    %c0_i32 = arith.constant 0 : i32
    %c0_i32_0 = arith.constant 0 : i32
    %c0_i32_1 = arith.constant 0 : i32
    return %c0_i32, %c0_i32_0 : i32, i32
  }
  func.func @transform_4(%arg0: i32) -> (i32, i32) {
    %c0_i32 = arith.constant 0 : i32
    %c0_i32_0 = arith.constant 0 : i32
    %c0_i32_1 = arith.constant 0 : i32
    return %c0_i32, %c0_i32_0 : i32, i32
  }
  func.func @transform_5(%arg0: i32) -> (i32, i32) {
    %c0_i32 = arith.constant 0 : i32
    %c0_i32_0 = arith.constant 0 : i32
    %c0_i32_1 = arith.constant 0 : i32
    return %c0_i32, %c0_i32_0 : i32, i32
  }
  func.func @transform_6(%arg0: i32) -> (i32, i32) {
    %c0_i32 = arith.constant 0 : i32
    %c0_i32_0 = arith.constant 0 : i32
    %c0_i32_1 = arith.constant 0 : i32
    return %c0_i32, %c0_i32_0 : i32, i32
  }
  func.func @transform_7(%arg0: i32) -> (i32, i32) {
    %c0_i32 = arith.constant 0 : i32
    %c0_i32_0 = arith.constant 0 : i32
    return %arg0, %c0_i32 : i32, i32
  }
}

</mosaic_0001>

<bundles_post_ra>
// kernel: tpu_custom_call.1
= control target key start
LH: loop header
LB: loop body
LE: loop exit
PB: predicated region body
PF: predicated region fallthrough
CT: control target
= control target key end

     0   :  { %12 = vsyncpa [#allocation3], 0  ;;  %s685_s0 = inlined_call_operand.hbm [shape: bf16[8,128], index: 0, kind: input, shape index: {}]   ;;  %s686_s1 = inlined_call_operand.hbm [shape: bf16[128,128], index: 1, kind: input, shape index: {}]   ;;  %s687_s2 = inlined_call_operand.vmem [shape: f32[1,128], index: 2, kind: input, shape index: {}]   ;;  %s688_s3 = inlined_call_operand.hbm [shape: bf16[128,128], index: 3, kind: input, shape index: {}]   ;;  %s689_s4 = inlined_call_operand.vmem [shape: f32[1,128], index: 4, kind: input, shape index: {}]   ;;  %s690_s5 = inlined_call_operand.hbm [shape: bf16[128,128], index: 5, kind: input, shape index: {}]   ;;  %s691_s6 = inlined_call_operand.vmem [shape: f32[1,128], index: 6, kind: input, shape index: {}]   ;;  %s692_s7 = inlined_call_operand.hbm [shape: f32[8,128], index: 7, kind: output, shape index: {}]  }
   0x1   :  { %13 = vsyncpa [#allocation6], 0 }
   0x2   :  { %14 = vsyncpa [#allocation9], 0  ;;  %s31_s26 = sshll.u32 %s686_s1, 4  ;;  %s32_s26 = int_to_ptr.hbm [resolvable:$true] %s31_s26 }
   0x3   :  { %15 = vsyncpa [#allocation4], 0  ;;  %s614_s27 = smov [#allocation5]   ;;  %s21_s8 = sshll.u32 %s685_s0, 4  ;;  %s22_s8 = int_to_ptr.hbm [resolvable:$true] %s21_s8 }
   0x4   :  { %s33_s28 = sshll.u32 %s614_s27, 4  ;;  %s615_s9 = smov 64   ;;  %s34_s28 = int_to_ptr.vmem [resolvable:$true] %s33_s28 }
   0x5   :  { %s616_s10 = smov 4   ;;  %s617_s11 = smov [#allocation2]  }
   0x6   :  { %39 = dma.hbm_to_vmem [thread:$0]  %s32_s26, 1024, %s34_s28, [#allocation6], %s615_s9, %s615_s9, %s616_s10  }
   0x7   :  { %s23_s12 = sshll.u32 %s617_s11, 4  ;;  %s46_s15 = sshll.u32 %s688_s3, 4  ;;  %s24_s12 = int_to_ptr.vmem [resolvable:$true] %s23_s12  ;;  %s47_s15 = int_to_ptr.hbm [resolvable:$true] %s46_s15 }
   0x8   :  { %26 = dma.hbm_to_vmem [thread:$0]  %s22_s8, 64, %s24_s12, [#allocation3]  }
   0x9   :  { %s61_s17 = sshll.u32 %s690_s5, 4  ;;  %s618_s18 = smov [#allocation7]   ;;  %s62_s17 = int_to_ptr.hbm [resolvable:$true] %s61_s17 }
   0xa   :  { %s48_s19 = sshll.u32 %s618_s18, 4  ;;  %s619_s0 = smov [#allocation8]   ;;  %s49_s19 = int_to_ptr.vmem [resolvable:$true] %s48_s19 }
   0xb   :  { %54 = dma.hbm_to_vmem [thread:$0]  %s47_s15, 1024, %s49_s19, [#allocation6], %s615_s9, %s615_s9, %s616_s10  }
   0xc   :  { %s63_s20 = sshll.u32 %s619_s0, 4  ;;  %s64_s20 = int_to_ptr.vmem [resolvable:$true] %s63_s20 }
   0xd   :  { %69 = dma.hbm_to_vmem [thread:$0]  %s62_s17, 1024, %s64_s20, [#allocation9], %s615_s9, %s615_s9, %s616_s10  }
   0xe   :  { %606 = dma.done.wait [#allocation3], 64  }
   0xf   :  { %607 = vsyncadd [#allocation3], 4294967232 }
  0x10   :  { %608 = dma.done.wait [#allocation6], 2048  }
  0x11   :  { %609 = vsyncadd [#allocation6], 4294965248 }
  0x12   :  { %610 = dma.done.wait [#allocation9], 1024  }
  0x13   :  { %611 = vsyncadd [#allocation9], 4294966272  ;;  %v459_v0 = vld [vmem:[#allocation5 + $0x38] sm:$0xff]  ;;  %v458_v1 = vld [vmem:[#allocation5 + $0x30] sm:$0xff]  ;;  %s620_s24 = smov [#allocation10]   ;;  %s344_s28 = sshll.u32 %s692_s7, 4  ;;  %s345_s28 = int_to_ptr.hbm [resolvable:$true] %s344_s28 }
  0x14   :  { %157 = vmatpush.bf16.msra.mxu0 %v459_v0  ;;  %v467_v2 = vld [vmem:[#allocation7 + $0x38] sm:$0xff]  ;;  %v466_v3 = vld [vmem:[#allocation7 + $0x30] sm:$0xff]  ;;  %v457_v4 = vld [vmem:[#allocation5 + $0x28] sm:$0xff]  ;;  %s342_s25 = sshll.u32 %s620_s24, 4  ;;  %s343_s25 = int_to_ptr.vmem [resolvable:$true] %s342_s25 }
  0x15   :  { %240 = vmatpush.bf16.msra.mxu1 %v467_v2  ;;  %v465_v5 = vld [vmem:[#allocation7 + $0x28] sm:$0xff]  ;;  %v456_v6 = vld [vmem:[#allocation5 + $0x20] sm:$0xff]  ;;  %v455_v8 = vld [vmem:[#allocation5 + $0x18] sm:$0xff] }
  0x16   :  { %v464_v7 = vld [vmem:[#allocation7 + $0x20] sm:$0xff]  ;;  %v463_v9 = vld [vmem:[#allocation7 + $0x18] sm:$0xff]  ;;  %v454_v10 = vld [vmem:[#allocation5 + $0x10] sm:$0xff] }
  0x17   :  { %v462_v11 = vld [vmem:[#allocation7 + $0x10] sm:$0xff]  ;;  %v453_v12 = vld [vmem:[#allocation5 + $0x8] sm:$0xff]  ;;  %v452_v13 = vld [vmem:[#allocation5] sm:$0xff] }
  0x18   :  { %158 = vmatpush.bf16.msra.mxu0 %v458_v1  ;;  %v88_v14 = vld [vmem:[#allocation2] sm:$0xf]  ;;  %v461_v15 = vld [vmem:[#allocation7 + $0x8] sm:$0xff]  ;;  %v460_v16 = vld [vmem:[#allocation7] sm:$0xff] }
  0x19   :  { %241 = vmatpush.bf16.msra.mxu1 %v466_v3  ;;  %v475_v17 = vld [vmem:[#allocation8 + $0x38] sm:$0xff]  ;;  %v474_v18 = vld [vmem:[#allocation8 + $0x30] sm:$0xff]  ;;  %v473_v19 = vld [vmem:[#allocation8 + $0x28] sm:$0xff] }
  0x1a   :  { %323 = vmatpush.bf16.msra.mxu2 %v475_v17  ;;  %v472_v20 = vld [vmem:[#allocation8 + $0x20] sm:$0xff]  ;;  %v471_v21 = vld [vmem:[#allocation8 + $0x18] sm:$0xff]  ;;  %v470_v22 = vld [vmem:[#allocation8 + $0x10] sm:$0xff] }
  0x1b   :  { %v483_v23 = vld [vmem:[%s687_s2] ss:$0 sm:$0xff]  ;;  %v469_v29 = vld [vmem:[#allocation8 + $0x8] sm:$0xff]  ;;  %v468_v30 = vld [vmem:[#allocation8] sm:$0xff] }
  0x1c   :  { %159 = vmatpush.bf16.msra.mxu0 %v457_v4  ;;  %v484_v31 = vld [vmem:[%s689_s4] ss:$0 sm:$0xff] }
  0x1d   :  { %242 = vmatpush.bf16.msra.mxu1 %v465_v5  ;;  %v485_v37 = vld [vmem:[%s691_s6] ss:$0 sm:$0xff] }
  0x1e   :  { %324 = vmatpush.bf16.msra.mxu2 %v474_v18 }
  0x20   :  { %160 = vmatpush.bf16.msra.mxu0 %v456_v6 }
  0x21   :  { %243 = vmatpush.bf16.msra.mxu1 %v464_v7 }
  0x22   :  { %325 = vmatpush.bf16.msra.mxu2 %v473_v19 }
  0x24   :  { %161 = vmatpush.bf16.msra.mxu0 %v455_v8 }
  0x25   :  { %244 = vmatpush.bf16.msra.mxu1 %v463_v9 }
  0x26   :  { %326 = vmatpush.bf16.msra.mxu2 %v472_v20 }
  0x28   :  { %162 = vmatpush.bf16.msra.mxu0 %v454_v10 }
  0x29   :  { %245 = vmatpush.bf16.msra.mxu1 %v462_v11 }
  0x2a   :  { %327 = vmatpush.bf16.msra.mxu2 %v471_v21 }
  0x2c   :  { %163 = vmatpush.bf16.msra.mxu0 %v453_v12 }
  0x2d   :  { %246 = vmatpush.bf16.msra.mxu1 %v461_v15 }
  0x2e   :  { %328 = vmatpush.bf16.msra.mxu2 %v470_v22 }
  0x30   :  { %164 = vmatpush.bf16.msra.mxu0 %v452_v13 }
  0x31   :  { %247 = vmatpush.bf16.msra.mxu1 %v460_v16 }
  0x32   :  { %329 = vmatpush.bf16.msra.mxu2 %v469_v29 }
  0x33   :  { %165 = vmatmul.bf16.vlgmr.msra.gmra.mxu0 %v88_v14 }
  0x36   :  { %330 = vmatpush.bf16.msra.mxu2 %v468_v30 }
  0xb0   :  { %v166_v24 = vpop.f32.mrf.mxu0 }
  0xb1   :  { %v167_v25 = vadd.f32 %v483_v23, %v166_v24 }
  0xb3   :  { %v170_v26 = vmax.f32 %v167_v25, 0.0 }
  0xb5   :  { %v171_v27 = vpack.c.bf16 %v170_v26, %v170_v26 }
  0xb7   :  { %248 = vmatmul.bf16.vlgmr.msra.gmra.mxu1 %v171_v27 }
  0xb8   :  { %v168_v28 = vpop.f32.mrf.mxu0 }
 0x134   :  { %v249_v32 = vpop.f32.mrf.mxu1 }
 0x135   :  { %v250_v33 = vadd.f32 %v484_v31, %v249_v32 }
 0x137   :  { %v253_v34 = vmax.f32 %v250_v33, 0.0 }
 0x139   :  { %v254_v35 = vpack.c.bf16 %v253_v34, %v253_v34 }
 0x13b   :  { %331 = vmatmul.bf16.vlgmr.msra.gmra.mxu2 %v254_v35 }
 0x13c   :  { %v251_v36 = vpop.f32.mrf.mxu1 }
 0x1be   :  { %v332_v38 = vpop.f32.mrf.mxu2 }
 0x1bf   :  { %v333_v39 = vadd.f32 %v485_v37, %v332_v38 }
 0x1c1   :  { %336 = vst [vmem:[#allocation10] sm:$0xff] %v333_v39 }
 0x1c2   :  { %347 = dma.vmem_to_hbm [thread:$0]  %s343_s25, 128, %s345_s28, [#allocation4]  }
 0x1c6   :  { %v334_v40 = vpop.f32.mrf.mxu2 }
 0x1c7   :  { %612 = dma.done.wait [#allocation4], 128  }
 0x1c8   :  { %613 = vsyncadd [#allocation4], 4294967168 }
 0x1c9   :  { %352 = vsyncpa [#allocation3], 1 }
 0x1ca   :  { %353 = vsyncpa [#allocation6], 1 }
 0x1cb   :  { %354 = vsyncpa [#allocation9], 1 }
 0x1cc   :  { %355 = vsyncpa [#allocation4], 1 }

</bundles_post_ra>
